<compile_context>
chip_gen: v7x
topology: tpu7x:2x2x1
jax: 0.10.0
libtpu: 0.0.40
codegen_flags: <defaults>
</compile_context>

<pallas_src>
import functools

import numpy as np
import jax
import jax.numpy as jnp
from jax.experimental import pallas as pl
from jax.experimental.pallas import tpu as pltpu


def _round_up(x, m):
    return ((x + m - 1) // m) * m


# ---------------------------------------------------------------------------
# Fused kernel: blendshape matmul -> persistent VMEM scratch -> per-region
# cube-normalized pred vs. pre-normalized target -> weighted scalar loss (SMEM).
# ---------------------------------------------------------------------------
def _fused_vertices3d_loss_kernel(params_ref, basis_ref, target_ref,
                                  out_ref, verts_ref, *,
                                  criterion, regions, weights, batch, lane_tile):
    n = pl.program_id(0)

    # --- streaming phase: blendshape matmul for this lane tile (MXU, f32 acc) ------
    # (mean shape is folded into the matmul as an extra K row of the basis)
    acc = jnp.dot(params_ref[...], basis_ref[...], preferred_element_type=jnp.float32)
    start = pl.multiple_of(n * lane_tile, 128)
    verts_ref[:, pl.ds(start, lane_tile)] = acc

    # --- finalize on the last tile: all region losses + weighted sum ---------------
    # TODO(synk): per-region pred min/max could also be accumulated during the
    # (DMA-bound) streaming phase to further shrink this serial tail.
    @pl.when(n == pl.num_programs(0) - 1)
    def _finalize():
        if criterion == "l1":
            err = lambda d: jnp.abs(d)
        elif criterion == "l2":
            err = lambda d: d * d
        else:  # smooth_l1, beta = 1.0 (PyTorch default)
            def err(d):
                ad = jnp.abs(d)
                return jnp.where(ad < 1.0, 0.5 * d * d, ad - 0.5)

        def norm_cube(x, y, z):
            # x, y, z: [B, r_pad] (one coordinate slab each, lanes are region vertices;
            # padded lanes replicate a real vertex so min/max are unchanged)
            mnx = jnp.min(x, axis=-1, keepdims=True); mxx = jnp.max(x, axis=-1, keepdims=True)
            mny = jnp.min(y, axis=-1, keepdims=True); mxy = jnp.max(y, axis=-1, keepdims=True)
            mnz = jnp.min(z, axis=-1, keepdims=True); mxz = jnp.max(z, axis=-1, keepdims=True)
            extent = jnp.maximum(jnp.maximum(mxx - mnx, mxy - mny), mxz - mnz)   # [B,1]
            # NOTE: no epsilon, matching the reference normalize_to_cube (degenerate
            # regions produce inf/nan exactly as in the PyTorch implementation).
            inv = pl.reciprocal(extent, approx=False)
            return ((x - 0.5 * (mnx + mxx)) * inv,
                    (y - 0.5 * (mny + mxy)) * inv,
                    (z - 0.5 * (mnz + mxz)) * inv)

        total = jnp.float32(0.0)
        for (base, r_pad, r_len), w in zip(regions, weights):
            # 128-lane-aligned static slices of the persistent VMEM scratch.
            px = verts_ref[0:batch, base:              base + r_pad]
            py = verts_ref[0:batch, base + r_pad:      base + 2 * r_pad]
            pz = verts_ref[0:batch, base + 2 * r_pad:  base + 3 * r_pad]
            px, py, pz = norm_cube(px, py, pz)
            # target slabs were cube-normalized in the JAX wrapper already.
            tx = target_ref[:, base:              base + r_pad]
            ty = target_ref[:, base + r_pad:      base + 2 * r_pad]
            tz = target_ref[:, base + 2 * r_pad:  base + 3 * r_pad]
            # merged single reduction per region (finalize tail is XLU-bound)
            e = err(px - tx) + err(py - ty) + err(pz - tz)                 # [B, r_pad]
            if r_pad != r_len:
                lane = jax.lax.broadcasted_iota(jnp.int32, (batch, r_pad), 1)
                e = jnp.where(lane < r_len, e, 0.0)        # mask replicated padding lanes
            total = total + jnp.float32(w) * (jnp.sum(e) / jnp.float32(batch * r_len * 3))

        out_ref[0, 0] = total


def _normalize_xyz(x, y, z):
    """Pure-JAX normalize_to_cube on coordinate slabs [B, R] (used for the target)."""
    mnx = jnp.min(x, axis=-1, keepdims=True); mxx = jnp.max(x, axis=-1, keepdims=True)
    mny = jnp.min(y, axis=-1, keepdims=True); mxy = jnp.max(y, axis=-1, keepdims=True)
    mnz = jnp.min(z, axis=-1, keepdims=True); mxz = jnp.max(z, axis=-1, keepdims=True)
    extent = jnp.maximum(jnp.maximum(mxx - mnx, mxy - mny), mxz - mnz)
    return ((x - 0.5 * (mnx + mxx)) / extent,
            (y - 0.5 * (mny + mxy)) / extent,
            (z - 0.5 * (mnz + mxz)) / extent)


# ---------------------------------------------------------------------------
# Module wrapper
# ---------------------------------------------------------------------------
class Vertices3DLoss:
    LOSSES = ("l1", "l2", "smooth_l1")

    def __init__(self, criterion, batch_size, basis, mean_shape, weights, indices,
                 *, lane_tile=1024, use_bf16=True):
        """
        criterion:  'l1' | 'l2' | 'smooth_l1'
        batch_size: static batch size B
        basis:      [P, V, 3] synthetic FLAME shape/expression basis
        mean_shape: [V, 3]    synthetic FLAME template
        weights:    tuple of floats              (from indices_reweighing)
        indices:    tuple of vertex-index arrays (from indices_reweighing)
        """
        if criterion not in self.LOSSES:
            raise ValueError(f"Unsupported discrepancy loss type {criterion}")
        assert lane_tile % 128 == 0 and lane_tile > 0
        assert len(weights) == len(indices)

        self.criterion = criterion
        self.batch_size = int(batch_size)
        self.compute_dtype = jnp.bfloat16 if use_bf16 else jnp.float32
        itemsize = 2 if use_bf16 else 4
        # bf16 matmul inputs with f32 accumulation is an intentional perf/precision
        # tradeoff (MXU-native); set use_bf16=False for f32 parity.

        basis_np = np.asarray(basis, dtype=np.float32)        # [P, V, 3]
        mean_np = np.asarray(mean_shape, dtype=np.float32)    # [V, 3]
        P = int(basis_np.shape[0])
        self.P = P
        self.Kp = _round_up(P + 1, 8)                         # params (+ ones col), 8-sublane pad
        self.Bp = max(8, _round_up(self.batch_size, 8))       # pad sublanes for vreg/MXU

        # --- region packing: 128-lane-aligned, coordinate-major slabs; padding
        #     REPLICATES a real region vertex (min/max unchanged); mean folded as a row ---
        indices = tuple(np.asarray(i, dtype=np.int32).reshape(-1) for i in indices)
        regions, basis_cols, tgt_idx = [], [], []
        base = 0
        for idx in indices:
            r_len = int(idx.shape[0])
            r_pad = _round_up(r_len, 128)
            pad_idx = np.concatenate([idx, np.full((r_pad - r_len,), idx[0], np.int32)])
            regions.append((base, r_pad, r_len))
            sub_b = basis_np[:, pad_idx, :]                                      # [P, r_pad, 3]
            sub_m = mean_np[pad_idx, :]                                          # [r_pad, 3]
            cols = np.concatenate([sub_b[:, :, c] for c in range(3)], axis=1)    # [P, 3*r_pad]
            mrow = np.concatenate([sub_m[:, c] for c in range(3)], axis=0)[None, :]
            basis_cols.append(np.concatenate([cols, mrow], axis=0))              # [P+1, 3*r_pad]
            tgt_idx.append(np.concatenate([pad_idx * 3 + c for c in range(3)]))
            base += 3 * r_pad
        self.regions = tuple(regions)
        self.weights = tuple(float(w) for w in weights)
        self.ncat = base                                      # multiple of 128 by construction
        lane_tile = min(lane_tile, self.ncat)
        self.lane_tile = lane_tile
        self.ncat_pad = _round_up(self.ncat, lane_tile)

        basis_cat = np.concatenate(basis_cols, axis=1)        # [P+1, ncat]
        basis_full = np.zeros((self.Kp, self.ncat_pad), np.float32)
        basis_full[:P + 1, :self.ncat] = basis_cat
        self.basis_cat = jnp.asarray(basis_full, dtype=self.compute_dtype)
        self.target_idx = jnp.asarray(np.concatenate(tgt_idx), dtype=jnp.int32)  # [ncat]

        # --- VMEM budget: actual footprint + headroom (64 MiB flat would be the whole
        #     v7x per-TC VMEM); optionally capped by the real hardware capacity. --------
        footprint = (
            self.Bp * self.ncat_pad * 4                       # verts scratch (resident)
            + 2 * self.Kp * lane_tile * itemsize              # basis tile, double-buffered
            + 2 * self.batch_size * self.ncat_pad * 4         # target (resident; 2 bufs worst case)
            + 2 * self.Bp * self.Kp * itemsize                # params (resident)
        )
        vmem_limit = int(footprint) + (8 << 20)               # headroom for Mosaic internals
        try:
            phys = int(pltpu.get_tpu_info().vmem_capacity_bytes)
            vmem_limit = min(vmem_limit, max(phys - (8 << 20), 16 << 20))
        except Exception:
            vmem_limit = min(vmem_limit, 56 << 20)            # v7x-safe fallback cap
        vmem_limit = max(vmem_limit, 16 << 20)

        # --- build the fused pallas_call once -------------------------------------------
        num_tiles = self.ncat_pad // lane_tile
        kern = functools.partial(
            _fused_vertices3d_loss_kernel,
            criterion=self.criterion,
            regions=self.regions,
            weights=self.weights,
            batch=self.batch_size,
            lane_tile=lane_tile,
        )
        self._pallas_fn = pl.pallas_call(
            kern,
            grid=(num_tiles,),
            out_shape=jax.ShapeDtypeStruct((1, 1), jnp.float32),
            in_specs=[
                # params (+ones column): resident, constant index map.
                # TODO(synk): on v7x at large batch, pipeline_mode=pl.Buffered(1) on the
                # resident inputs would halve their VMEM footprint.
                pl.BlockSpec((self.Bp, self.Kp), lambda n: (0, 0)),
                pl.BlockSpec((self.Kp, lane_tile), lambda n: (0, n)),              # basis tile
                pl.BlockSpec((self.batch_size, self.ncat_pad), lambda n: (0, 0)),  # normalized target
            ],
            out_specs=pl.BlockSpec(memory_space=pltpu.MemorySpace.SMEM),           # (1,1) scalar
            scratch_shapes=[pltpu.VMEM((self.Bp, self.ncat_pad), jnp.float32)],    # verts stay in VMEM
            compiler_params=pltpu.CompilerParams(
                # "arbitrary": the finalize step reads every tile of the persistent scratch,
                # so this axis must not be sharded across TensorCores.
                dimension_semantics=("arbitrary",),
                vmem_limit_bytes=vmem_limit,
            ),
        )
        self._jit_forward = jax.jit(self._forward)

    def _forward(self, predicted, target):
        B = self.batch_size
        # params with a ones column (folds the mean-shape basis row into the matmul)
        params = jnp.concatenate(
            [predicted.astype(jnp.float32), jnp.ones((B, 1), jnp.float32)], axis=1)
        params = jnp.pad(params, ((0, self.Bp - B), (0, self.Kp - (self.P + 1))))
        params = params.astype(self.compute_dtype)

        # One flat gather produces the target already in region-concatenated,
        # coordinate-major, 128-aligned layout; normalize_to_cube runs here (it is
        # independent of the kernel's matmul), removing its reductions from the
        # kernel's serial finalize tail.
        tgt_flat = target.reshape(B, -1).astype(jnp.float32)       # [B, 3V] (free reshape)
        tgt_cat = jnp.take(tgt_flat, self.target_idx, axis=1)      # [B, ncat]
        parts = []
        for (base, r_pad, r_len) in self.regions:
            x = tgt_cat[:, base:              base + r_pad]
            y = tgt_cat[:, base + r_pad:      base + 2 * r_pad]
            z = tgt_cat[:, base + 2 * r_pad:  base + 3 * r_pad]
            parts.extend(_normalize_xyz(x, y, z))
        tgt_norm = jnp.concatenate(parts, axis=1)                  # [B, ncat]
        tgt_norm = jnp.pad(tgt_norm, ((0, 0), (0, self.ncat_pad - self.ncat)))

        out = self._pallas_fn(params, self.basis_cat, tgt_norm)
        return out[0, 0]

    def __call__(self, predicted, target):
        """predicted: [B, P] 3DMM params, target: [B, V, 3] GT vertices -> scalar loss."""
        return self._jit_forward(predicted, target)


# ---------------------------------------------------------------------------
# Pure-JAX reference (f32) for a sanity check
# ---------------------------------------------------------------------------
def _reference_loss(predicted, target, basis, mean_shape, weights, indices, criterion):
    pred_v = mean_shape[None] + jnp.einsum("bp,pvc->bvc", predicted, basis)

    def norm_cube(x):  # [B, R, 3]
        mn = x.min(axis=1, keepdims=True)
        mx = x.max(axis=1, keepdims=True)
        extent = (mx - mn).max(axis=-1, keepdims=True)
        return (x - 0.5 * (mn + mx)) / extent

    def err(d):
        if criterion == "l1":
            return jnp.abs(d)
        if criterion == "l2":
            return d * d
        ad = jnp.abs(d)
        return jnp.where(ad < 1.0, 0.5 * d * d, ad - 0.5)

    total = jnp.float32(0.0)
    for w, idx in zip(weights, indices):
        p = norm_cube(pred_v[:, idx])
        t = norm_cube(target[:, idx])
        total = total + jnp.float32(w) * jnp.mean(err(p - t))
    return total


# ---------------------------------------------------------------------------
# Demo
# ---------------------------------------------------------------------------
if __name__ == "__main__":
    key = jax.random.PRNGKey(0)
    B, P, V = 2, 32, 128  # batch, num 3DMM params, num mesh vertices

    k1, k2, k3, k4 = jax.random.split(key, 4)
    predicted_params = jax.random.normal(k1, (B, P), dtype=jnp.float32)
    target_vertices = jax.random.normal(k2, (B, V, 3), dtype=jnp.float32)

    # Deterministic synthetic FLAME parameters (basis + template)
    basis = 0.01 * jax.random.normal(k3, (P, V, 3), dtype=jnp.float32)
    mean_shape = jax.random.normal(k4, (V, 3), dtype=jnp.float32)

    # Deterministic per-region weights and vertex index sets (output of indices_reweighing)
    weights = (1.0, 2.0, 0.5)
    indices = (
        np.arange(V, dtype=np.int32),          # full head
        np.arange(64, dtype=np.int32),         # "face" subset
        np.arange(32, 96, dtype=np.int32),     # "lips/eyes" subset
    )

    loss_fn = Vertices3DLoss("l1", batch_size=B, basis=basis, mean_shape=mean_shape,
                             weights=weights, indices=indices)
    loss = loss_fn(predicted_params, target_vertices)
    jax.block_until_ready(loss)

    ref = _reference_loss(predicted_params, target_vertices, basis, mean_shape,
                          weights, indices, "l1")
    assert loss.shape == () and bool(jnp.isfinite(loss))
    assert abs(float(loss) - float(ref)) <= 5e-2 * abs(float(ref)) + 5e-3, (float(loss), float(ref))
    print("KERNEL_OK")
</pallas_src>

<mosaic_0001>
module attributes {stable_mosaic.version = 11 : i64} {
  func.func @_fused_vertices3d_loss_kernel(%arg0: i32, %arg1: memref<8x40xbf16, #tpu.memory_space<vmem>>, %arg2: memref<40x1024xbf16, #tpu.memory_space<vmem>>, %arg3: memref<2x2048xf32, #tpu.memory_space<vmem>>, %arg4: memref<1x1xf32, #tpu.memory_space<smem>>, %arg5: memref<8x2048xf32, #tpu.memory_space<vmem>>) attributes {dimension_semantics = [#tpu.dimension_semantics<arbitrary>], iteration_bounds = array<i64: 2>, scalar_prefetch = 0 : i64, scratch_operands = 1 : i64, tpu.core_type = #tpu.core_type<tc>, window_params = [{pipeline_mode = #tpu.pipeline_mode<synchronous>, transform_indices = @transform_0, window_bounds = array<i64: 8, 40>}, {transform_indices = @transform_1, window_bounds = array<i64: 40, 1024>}, {pipeline_mode = #tpu.pipeline_mode<synchronous>, transform_indices = @transform_2, window_bounds = array<i64: 2, 2048>}, {transform_indices = @transform_3, window_bounds = array<i64: 1, 1>}]} {
    %c0 = arith.constant 0 : index
    %c0_0 = arith.constant 0 : index
    %0 = vector.load %arg1[%c0, %c0_0] : memref<8x40xbf16, #tpu.memory_space<vmem>>, vector<8x40xbf16>
    %c0_1 = arith.constant 0 : index
    %c0_2 = arith.constant 0 : index
    %1 = vector.load %arg2[%c0_1, %c0_2] : memref<40x1024xbf16, #tpu.memory_space<vmem>>, vector<40x1024xbf16>
    %cst = arith.constant dense<0.000000e+00> : vector<8x1024xf32>
    %2 = tpu.matmul %0, %1, %cst {dimension_numbers = #tpu.dot_dimension_numbers<[1], [0], [0], [1], [0, 0, 1, 1], [], []>} : vector<8x40xbf16>, vector<40x1024xbf16>, vector<8x1024xf32> -> vector<8x1024xf32>
    %c1024_i32 = arith.constant 1024 : i32
    %3 = arith.muli %arg0, %c1024_i32 : i32
    %4 = tpu.assume_multiple %3, 128 : i32
    %c0_3 = arith.constant 0 : index
    %5 = arith.index_cast %4 : i32 to index
    %6 = vector.load %arg5[%c0_3, %5] : memref<8x2048xf32, #tpu.memory_space<vmem>>, vector<8x1024xf32>
    tpu.vector_store %arg5[%c0_3, %5], %2 {strides = array<i32>} : memref<8x2048xf32, #tpu.memory_space<vmem>>, vector<8x1024xf32>,
    %c1_i32 = arith.constant 1 : i32
    %7 = arith.cmpi eq, %arg0, %c1_i32 : i32
    %8 = arith.extui %7 : i1 to i32
    %c0_i32 = arith.constant 0 : i32
    %9 = arith.cmpi ne, %8, %c0_i32 : i32
    scf.if %9 {
      %c0_4 = arith.constant 0 : index
      %c0_5 = arith.constant 0 : index
      %10 = vector.load %arg5[%c0_4, %c0_5] : memref<8x2048xf32, #tpu.memory_space<vmem>>, vector<2x128xf32>
      %c0_6 = arith.constant 0 : index
      %c128 = arith.constant 128 : index
      %11 = vector.load %arg5[%c0_6, %c128] : memref<8x2048xf32, #tpu.memory_space<vmem>>, vector<2x128xf32>
      %c0_7 = arith.constant 0 : index
      %c256 = arith.constant 256 : index
      %12 = vector.load %arg5[%c0_7, %c256] : memref<8x2048xf32, #tpu.memory_space<vmem>>, vector<2x128xf32>
      %cst_8 = arith.constant dense<0x7F800000> : vector<2xf32>
      %13 = vector.multi_reduction <minimumf>, %10, %cst_8 [1] : vector<2x128xf32> to vector<2xf32>
      %14 = vector.shape_cast %13 : vector<2xf32> to vector<2x1xf32>
      %cst_9 = arith.constant dense<0xFF800000> : vector<2xf32>
      %15 = vector.multi_reduction <maximumf>, %10, %cst_9 [1] : vector<2x128xf32> to vector<2xf32>
      %16 = vector.shape_cast %15 : vector<2xf32> to vector<2x1xf32>
      %cst_10 = arith.constant dense<0x7F800000> : vector<2xf32>
      %17 = vector.multi_reduction <minimumf>, %11, %cst_10 [1] : vector<2x128xf32> to vector<2xf32>
      %18 = vector.shape_cast %17 : vector<2xf32> to vector<2x1xf32>
      %cst_11 = arith.constant dense<0xFF800000> : vector<2xf32>
      %19 = vector.multi_reduction <maximumf>, %11, %cst_11 [1] : vector<2x128xf32> to vector<2xf32>
      %20 = vector.shape_cast %19 : vector<2xf32> to vector<2x1xf32>
      %cst_12 = arith.constant dense<0x7F800000> : vector<2xf32>
      %21 = vector.multi_reduction <minimumf>, %12, %cst_12 [1] : vector<2x128xf32> to vector<2xf32>
      %22 = vector.shape_cast %21 : vector<2xf32> to vector<2x1xf32>
      %cst_13 = arith.constant dense<0xFF800000> : vector<2xf32>
      %23 = vector.multi_reduction <maximumf>, %12, %cst_13 [1] : vector<2x128xf32> to vector<2xf32>
      %24 = vector.shape_cast %23 : vector<2xf32> to vector<2x1xf32>
      %25 = arith.subf %16, %14 : vector<2x1xf32>
      %26 = arith.subf %20, %18 : vector<2x1xf32>
      %27 = arith.maximumf %25, %26 : vector<2x1xf32>
      %28 = arith.subf %24, %22 : vector<2x1xf32>
      %29 = arith.maximumf %27, %28 : vector<2x1xf32>
      %30 = tpu.reciprocal %29 : vector<2x1xf32> -> vector<2x1xf32>
      %31 = arith.addf %14, %16 : vector<2x1xf32>
      %cst_14 = arith.constant 5.000000e-01 : f32
      %32 = vector.broadcast %cst_14 : f32 to vector<2x1xf32>
      %33 = arith.mulf %32, %31 : vector<2x1xf32>
      %34 = vector.broadcast %33 : vector<2x1xf32> to vector<2x128xf32>
      %35 = arith.subf %10, %34 : vector<2x128xf32>
      %36 = vector.broadcast %30 : vector<2x1xf32> to vector<2x128xf32>
      %37 = arith.mulf %35, %36 : vector<2x128xf32>
      %38 = arith.addf %18, %20 : vector<2x1xf32>
      %cst_15 = arith.constant 5.000000e-01 : f32
      %39 = vector.broadcast %cst_15 : f32 to vector<2x1xf32>
      %40 = arith.mulf %39, %38 : vector<2x1xf32>
      %41 = vector.broadcast %40 : vector<2x1xf32> to vector<2x128xf32>
      %42 = arith.subf %11, %41 : vector<2x128xf32>
      %43 = vector.broadcast %30 : vector<2x1xf32> to vector<2x128xf32>
      %44 = arith.mulf %42, %43 : vector<2x128xf32>
      %45 = arith.addf %22, %24 : vector<2x1xf32>
      %cst_16 = arith.constant 5.000000e-01 : f32
      %46 = vector.broadcast %cst_16 : f32 to vector<2x1xf32>
      %47 = arith.mulf %46, %45 : vector<2x1xf32>
      %48 = vector.broadcast %47 : vector<2x1xf32> to vector<2x128xf32>
      %49 = arith.subf %12, %48 : vector<2x128xf32>
      %50 = vector.broadcast %30 : vector<2x1xf32> to vector<2x128xf32>
      %51 = arith.mulf %49, %50 : vector<2x128xf32>
      %c0_17 = arith.constant 0 : index
      %c0_18 = arith.constant 0 : index
      %52 = vector.load %arg3[%c0_17, %c0_18] : memref<2x2048xf32, #tpu.memory_space<vmem>>, vector<2x128xf32>
      %c0_19 = arith.constant 0 : index
      %c128_20 = arith.constant 128 : index
      %53 = vector.load %arg3[%c0_19, %c128_20] : memref<2x2048xf32, #tpu.memory_space<vmem>>, vector<2x128xf32>
      %c0_21 = arith.constant 0 : index
      %c256_22 = arith.constant 256 : index
      %54 = vector.load %arg3[%c0_21, %c256_22] : memref<2x2048xf32, #tpu.memory_space<vmem>>, vector<2x128xf32>
      %55 = arith.subf %37, %52 : vector<2x128xf32>
      %56 = math.absf %55 : vector<2x128xf32>
      %57 = arith.subf %44, %53 : vector<2x128xf32>
      %58 = math.absf %57 : vector<2x128xf32>
      %59 = arith.addf %56, %58 : vector<2x128xf32>
      %60 = arith.subf %51, %54 : vector<2x128xf32>
      %61 = math.absf %60 : vector<2x128xf32>
      %62 = arith.addf %59, %61 : vector<2x128xf32>
      %63 = vector.shape_cast %62 : vector<2x128xf32> to vector<1x2x128xf32>
      %cst_23 = arith.constant dense<0.000000e+00> : vector<1xf32>
      %64 = vector.multi_reduction <add>, %63, %cst_23 [1, 2] : vector<1x2x128xf32> to vector<1xf32>
      %65 = vector.shape_cast %64 : vector<1xf32> to vector<1x1x1xf32>
      %66 = vector.extract %65[0, 0, 0] : f32 from vector<1x1x1xf32>
      %cst_24 = arith.constant 7.680000e+02 : f32
      %67 = arith.divf %66, %cst_24 : f32
      %cst_25 = arith.constant 1.000000e+00 : f32
      %68 = arith.mulf %cst_25, %67 : f32
      %cst_26 = arith.constant 0.000000e+00 : f32
      %69 = arith.addf %cst_26, %68 : f32
      %c0_27 = arith.constant 0 : index
      %c384 = arith.constant 384 : index
      %70 = vector.load %arg5[%c0_27, %c384] : memref<8x2048xf32, #tpu.memory_space<vmem>>, vector<2x128xf32>
      %c0_28 = arith.constant 0 : index
      %c512 = arith.constant 512 : index
      %71 = vector.load %arg5[%c0_28, %c512] : memref<8x2048xf32, #tpu.memory_space<vmem>>, vector<2x128xf32>
      %c0_29 = arith.constant 0 : index
      %c640 = arith.constant 640 : index
      %72 = vector.load %arg5[%c0_29, %c640] : memref<8x2048xf32, #tpu.memory_space<vmem>>, vector<2x128xf32>
      %cst_30 = arith.constant dense<0x7F800000> : vector<2xf32>
      %73 = vector.multi_reduction <minimumf>, %70, %cst_30 [1] : vector<2x128xf32> to vector<2xf32>
      %74 = vector.shape_cast %73 : vector<2xf32> to vector<2x1xf32>
      %cst_31 = arith.constant dense<0xFF800000> : vector<2xf32>
      %75 = vector.multi_reduction <maximumf>, %70, %cst_31 [1] : vector<2x128xf32> to vector<2xf32>
      %76 = vector.shape_cast %75 : vector<2xf32> to vector<2x1xf32>
      %cst_32 = arith.constant dense<0x7F800000> : vector<2xf32>
      %77 = vector.multi_reduction <minimumf>, %71, %cst_32 [1] : vector<2x128xf32> to vector<2xf32>
      %78 = vector.shape_cast %77 : vector<2xf32> to vector<2x1xf32>
      %cst_33 = arith.constant dense<0xFF800000> : vector<2xf32>
      %79 = vector.multi_reduction <maximumf>, %71, %cst_33 [1] : vector<2x128xf32> to vector<2xf32>
      %80 = vector.shape_cast %79 : vector<2xf32> to vector<2x1xf32>
      %cst_34 = arith.constant dense<0x7F800000> : vector<2xf32>
      %81 = vector.multi_reduction <minimumf>, %72, %cst_34 [1] : vector<2x128xf32> to vector<2xf32>
      %82 = vector.shape_cast %81 : vector<2xf32> to vector<2x1xf32>
      %cst_35 = arith.constant dense<0xFF800000> : vector<2xf32>
      %83 = vector.multi_reduction <maximumf>, %72, %cst_35 [1] : vector<2x128xf32> to vector<2xf32>
      %84 = vector.shape_cast %83 : vector<2xf32> to vector<2x1xf32>
      %85 = arith.subf %76, %74 : vector<2x1xf32>
      %86 = arith.subf %80, %78 : vector<2x1xf32>
      %87 = arith.maximumf %85, %86 : vector<2x1xf32>
      %88 = arith.subf %84, %82 : vector<2x1xf32>
      %89 = arith.maximumf %87, %88 : vector<2x1xf32>
      %90 = tpu.reciprocal %89 : vector<2x1xf32> -> vector<2x1xf32>
      %91 = arith.addf %74, %76 : vector<2x1xf32>
      %cst_36 = arith.constant 5.000000e-01 : f32
      %92 = vector.broadcast %cst_36 : f32 to vector<2x1xf32>
      %93 = arith.mulf %92, %91 : vector<2x1xf32>
      %94 = vector.broadcast %93 : vector<2x1xf32> to vector<2x128xf32>
      %95 = arith.subf %70, %94 : vector<2x128xf32>
      %96 = vector.broadcast %90 : vector<2x1xf32> to vector<2x128xf32>
      %97 = arith.mulf %95, %96 : vector<2x128xf32>
      %98 = arith.addf %78, %80 : vector<2x1xf32>
      %cst_37 = arith.constant 5.000000e-01 : f32
      %99 = vector.broadcast %cst_37 : f32 to vector<2x1xf32>
      %100 = arith.mulf %99, %98 : vector<2x1xf32>
      %101 = vector.broadcast %100 : vector<2x1xf32> to vector<2x128xf32>
      %102 = arith.subf %71, %101 : vector<2x128xf32>
      %103 = vector.broadcast %90 : vector<2x1xf32> to vector<2x128xf32>
      %104 = arith.mulf %102, %103 : vector<2x128xf32>
      %105 = arith.addf %82, %84 : vector<2x1xf32>
      %cst_38 = arith.constant 5.000000e-01 : f32
      %106 = vector.broadcast %cst_38 : f32 to vector<2x1xf32>
      %107 = arith.mulf %106, %105 : vector<2x1xf32>
      %108 = vector.broadcast %107 : vector<2x1xf32> to vector<2x128xf32>
      %109 = arith.subf %72, %108 : vector<2x128xf32>
      %110 = vector.broadcast %90 : vector<2x1xf32> to vector<2x128xf32>
      %111 = arith.mulf %109, %110 : vector<2x128xf32>
      %c0_39 = arith.constant 0 : index
      %c384_40 = arith.constant 384 : index
      %112 = vector.load %arg3[%c0_39, %c384_40] : memref<2x2048xf32, #tpu.memory_space<vmem>>, vector<2x128xf32>
      %c0_41 = arith.constant 0 : index
      %c512_42 = arith.constant 512 : index
      %113 = vector.load %arg3[%c0_41, %c512_42] : memref<2x2048xf32, #tpu.memory_space<vmem>>, vector<2x128xf32>
      %c0_43 = arith.constant 0 : index
      %c640_44 = arith.constant 640 : index
      %114 = vector.load %arg3[%c0_43, %c640_44] : memref<2x2048xf32, #tpu.memory_space<vmem>>, vector<2x128xf32>
      %115 = arith.subf %97, %112 : vector<2x128xf32>
      %116 = math.absf %115 : vector<2x128xf32>
      %117 = arith.subf %104, %113 : vector<2x128xf32>
      %118 = math.absf %117 : vector<2x128xf32>
      %119 = arith.addf %116, %118 : vector<2x128xf32>
      %120 = arith.subf %111, %114 : vector<2x128xf32>
      %121 = math.absf %120 : vector<2x128xf32>
      %122 = arith.addf %119, %121 : vector<2x128xf32>
      %123 = tpu.iota {dimensions = array<i32: 1>} : vector<2x128xi32>
      %c64_i32 = arith.constant 64 : i32
      %124 = vector.broadcast %c64_i32 : i32 to vector<2x128xi32>
      %125 = arith.cmpi slt, %123, %124 : vector<2x128xi32>
      %cst_45 = arith.constant 0.000000e+00 : f32
      %126 = vector.broadcast %cst_45 : f32 to vector<2x128xf32>
      %127 = arith.select %125, %122, %126 : vector<2x128xi1>, vector<2x128xf32>
      %128 = vector.shape_cast %127 : vector<2x128xf32> to vector<1x2x128xf32>
      %cst_46 = arith.constant dense<0.000000e+00> : vector<1xf32>
      %129 = vector.multi_reduction <add>, %128, %cst_46 [1, 2] : vector<1x2x128xf32> to vector<1xf32>
      %130 = vector.shape_cast %129 : vector<1xf32> to vector<1x1x1xf32>
      %131 = vector.extract %130[0, 0, 0] : f32 from vector<1x1x1xf32>
      %cst_47 = arith.constant 3.840000e+02 : f32
      %132 = arith.divf %131, %cst_47 : f32
      %cst_48 = arith.constant 2.000000e+00 : f32
      %133 = arith.mulf %cst_48, %132 : f32
      %134 = arith.addf %69, %133 : f32
      %c0_49 = arith.constant 0 : index
      %c768 = arith.constant 768 : index
      %135 = vector.load %arg5[%c0_49, %c768] : memref<8x2048xf32, #tpu.memory_space<vmem>>, vector<2x128xf32>
      %c0_50 = arith.constant 0 : index
      %c896 = arith.constant 896 : index
      %136 = vector.load %arg5[%c0_50, %c896] : memref<8x2048xf32, #tpu.memory_space<vmem>>, vector<2x128xf32>
      %c0_51 = arith.constant 0 : index
      %c1024 = arith.constant 1024 : index
      %137 = vector.load %arg5[%c0_51, %c1024] : memref<8x2048xf32, #tpu.memory_space<vmem>>, vector<2x128xf32>
      %cst_52 = arith.constant dense<0x7F800000> : vector<2xf32>
      %138 = vector.multi_reduction <minimumf>, %135, %cst_52 [1] : vector<2x128xf32> to vector<2xf32>
      %139 = vector.shape_cast %138 : vector<2xf32> to vector<2x1xf32>
      %cst_53 = arith.constant dense<0xFF800000> : vector<2xf32>
      %140 = vector.multi_reduction <maximumf>, %135, %cst_53 [1] : vector<2x128xf32> to vector<2xf32>
      %141 = vector.shape_cast %140 : vector<2xf32> to vector<2x1xf32>
      %cst_54 = arith.constant dense<0x7F800000> : vector<2xf32>
      %142 = vector.multi_reduction <minimumf>, %136, %cst_54 [1] : vector<2x128xf32> to vector<2xf32>
      %143 = vector.shape_cast %142 : vector<2xf32> to vector<2x1xf32>
      %cst_55 = arith.constant dense<0xFF800000> : vector<2xf32>
      %144 = vector.multi_reduction <maximumf>, %136, %cst_55 [1] : vector<2x128xf32> to vector<2xf32>
      %145 = vector.shape_cast %144 : vector<2xf32> to vector<2x1xf32>
      %cst_56 = arith.constant dense<0x7F800000> : vector<2xf32>
      %146 = vector.multi_reduction <minimumf>, %137, %cst_56 [1] : vector<2x128xf32> to vector<2xf32>
      %147 = vector.shape_cast %146 : vector<2xf32> to vector<2x1xf32>
      %cst_57 = arith.constant dense<0xFF800000> : vector<2xf32>
      %148 = vector.multi_reduction <maximumf>, %137, %cst_57 [1] : vector<2x128xf32> to vector<2xf32>
      %149 = vector.shape_cast %148 : vector<2xf32> to vector<2x1xf32>
      %150 = arith.subf %141, %139 : vector<2x1xf32>
      %151 = arith.subf %145, %143 : vector<2x1xf32>
      %152 = arith.maximumf %150, %151 : vector<2x1xf32>
      %153 = arith.subf %149, %147 : vector<2x1xf32>
      %154 = arith.maximumf %152, %153 : vector<2x1xf32>
      %155 = tpu.reciprocal %154 : vector<2x1xf32> -> vector<2x1xf32>
      %156 = arith.addf %139, %141 : vector<2x1xf32>
      %cst_58 = arith.constant 5.000000e-01 : f32
      %157 = vector.broadcast %cst_58 : f32 to vector<2x1xf32>
      %158 = arith.mulf %157, %156 : vector<2x1xf32>
      %159 = vector.broadcast %158 : vector<2x1xf32> to vector<2x128xf32>
      %160 = arith.subf %135, %159 : vector<2x128xf32>
      %161 = vector.broadcast %155 : vector<2x1xf32> to vector<2x128xf32>
      %162 = arith.mulf %160, %161 : vector<2x128xf32>
      %163 = arith.addf %143, %145 : vector<2x1xf32>
      %cst_59 = arith.constant 5.000000e-01 : f32
      %164 = vector.broadcast %cst_59 : f32 to vector<2x1xf32>
      %165 = arith.mulf %164, %163 : vector<2x1xf32>
      %166 = vector.broadcast %165 : vector<2x1xf32> to vector<2x128xf32>
      %167 = arith.subf %136, %166 : vector<2x128xf32>
      %168 = vector.broadcast %155 : vector<2x1xf32> to vector<2x128xf32>
      %169 = arith.mulf %167, %168 : vector<2x128xf32>
      %170 = arith.addf %147, %149 : vector<2x1xf32>
      %cst_60 = arith.constant 5.000000e-01 : f32
      %171 = vector.broadcast %cst_60 : f32 to vector<2x1xf32>
      %172 = arith.mulf %171, %170 : vector<2x1xf32>
      %173 = vector.broadcast %172 : vector<2x1xf32> to vector<2x128xf32>
      %174 = arith.subf %137, %173 : vector<2x128xf32>
      %175 = vector.broadcast %155 : vector<2x1xf32> to vector<2x128xf32>
      %176 = arith.mulf %174, %175 : vector<2x128xf32>
      %c0_61 = arith.constant 0 : index
      %c768_62 = arith.constant 768 : index
      %177 = vector.load %arg3[%c0_61, %c768_62] : memref<2x2048xf32, #tpu.memory_space<vmem>>, vector<2x128xf32>
      %c0_63 = arith.constant 0 : index
      %c896_64 = arith.constant 896 : index
      %178 = vector.load %arg3[%c0_63, %c896_64] : memref<2x2048xf32, #tpu.memory_space<vmem>>, vector<2x128xf32>
      %c0_65 = arith.constant 0 : index
      %c1024_66 = arith.constant 1024 : index
      %179 = vector.load %arg3[%c0_65, %c1024_66] : memref<2x2048xf32, #tpu.memory_space<vmem>>, vector<2x128xf32>
      %180 = arith.subf %162, %177 : vector<2x128xf32>
      %181 = math.absf %180 : vector<2x128xf32>
      %182 = arith.subf %169, %178 : vector<2x128xf32>
      %183 = math.absf %182 : vector<2x128xf32>
      %184 = arith.addf %181, %183 : vector<2x128xf32>
      %185 = arith.subf %176, %179 : vector<2x128xf32>
      %186 = math.absf %185 : vector<2x128xf32>
      %187 = arith.addf %184, %186 : vector<2x128xf32>
      %188 = tpu.iota {dimensions = array<i32: 1>} : vector<2x128xi32>
      %c64_i32_67 = arith.constant 64 : i32
      %189 = vector.broadcast %c64_i32_67 : i32 to vector<2x128xi32>
      %190 = arith.cmpi slt, %188, %189 : vector<2x128xi32>
      %cst_68 = arith.constant 0.000000e+00 : f32
      %191 = vector.broadcast %cst_68 : f32 to vector<2x128xf32>
      %192 = arith.select %190, %187, %191 : vector<2x128xi1>, vector<2x128xf32>
      %193 = vector.shape_cast %192 : vector<2x128xf32> to vector<1x2x128xf32>
      %cst_69 = arith.constant dense<0.000000e+00> : vector<1xf32>
      %194 = vector.multi_reduction <add>, %193, %cst_69 [1, 2] : vector<1x2x128xf32> to vector<1xf32>
      %195 = vector.shape_cast %194 : vector<1xf32> to vector<1x1x1xf32>
      %196 = vector.extract %195[0, 0, 0] : f32 from vector<1x1x1xf32>
      %cst_70 = arith.constant 3.840000e+02 : f32
      %197 = arith.divf %196, %cst_70 : f32
      %cst_71 = arith.constant 5.000000e-01 : f32
      %198 = arith.mulf %cst_71, %197 : f32
      %199 = arith.addf %134, %198 : f32
      %c0_72 = arith.constant 0 : index
      %c0_73 = arith.constant 0 : index
      %200 = memref.load %arg4[%c0_72, %c0_73] : memref<1x1xf32, #tpu.memory_space<smem>>
      memref.store %199, %arg4[%c0_72, %c0_73] : memref<1x1xf32, #tpu.memory_space<smem>>
    } else {
    }
    return
  }
  func.func @transform_0(%arg0: i32) -> (i32, i32) {
    %c0_i32 = arith.constant 0 : i32
    %c0_i32_0 = arith.constant 0 : i32
    %c0_i32_1 = arith.constant 0 : i32
    return %c0_i32, %c0_i32_0 : i32, i32
  }
  func.func @transform_1(%arg0: i32) -> (i32, i32) {
    %c0_i32 = arith.constant 0 : i32
    %c0_i32_0 = arith.constant 0 : i32
    return %c0_i32, %arg0 : i32, i32
  }
  func.func @transform_2(%arg0: i32) -> (i32, i32) {
    %c0_i32 = arith.constant 0 : i32
    %c0_i32_0 = arith.constant 0 : i32
    %c0_i32_1 = arith.constant 0 : i32
    return %c0_i32, %c0_i32_0 : i32, i32
  }
  func.func @transform_3(%arg0: i32) -> (i32, i32) {
    %c0_i32 = arith.constant 0 : i32
    %c0_i32_0 = arith.constant 0 : i32
    %c0_i32_1 = arith.constant 0 : i32
    return %c0_i32, %c0_i32_0 : i32, i32
  }
}

</mosaic_0001>

<bundles_post_ra>
// kernel: _forward.1
= control target key start
LH: loop header
LB: loop body
LE: loop exit
PB: predicated region body
PF: predicated region fallthrough
CT: control target
= control target key end

     0   :  { %8 = vsyncpa [#allocation5], 0  ;;  %s965_s12 = smov 0   ;;  %s967_s13 = smov 0   ;;  %s1209_s0 = inlined_call_operand.vmem [shape: bf16[8,40], index: 0, kind: input, shape index: {}]   ;;  %s1210_s1 = inlined_call_operand.vmem [shape: bf16[40,2048], index: 1, kind: input, shape index: {}]   ;;  %s1211_s2 = inlined_call_operand.vmem [shape: f32[2,2048], index: 2, kind: input, shape index: {}]   ;;  %s1212_s3 = inlined_call_operand.hbm [shape: f32[1,1], index: 3, kind: output, shape index: {}]  }
   0x1   :  { %s969_s14 = smov 0  }
   0x2 LB: > { %s981_s15 = sadd.s32 4294967295, %s941_s14   ;;  %s984_s16 = sadd.s32 1, %s941_s14   ;;  %s941_s14 = sphi %s969_s14, %s1215_s14   ;;  %s937_s13 = sphi %s967_s13, %s1214_s13   ;;  %s933_s12 = sphi %s965_s12, %s1213_s12  }
   0x3   : > { %s39_s17 = ssub.s32 %s941_s14, %s984_s16  ;;  %s42_s18 = sadd.s32 1, %s937_s13 }
   0x4   : > { %p40_p0 = scmp.eq.s32.totalorder %s39_s17, 0  ;;  %p49_p1 = scmp.ne.s32.totalorder %s937_s13, %s933_s12 }
   0x5   : > { %p50_p2 = scmp.eq.s32.totalorder %s941_s14, 0  ;;  %p805_p4 = scmp.ge.s32.totalorder %s941_s14, 2 }
   0x6   : > { %s993_s19 = scalar_select %p40_p0, %s937_s13, %s42_s18  }
   0x7   : > { %p51_p3 = por %p50_p2, %p49_p1  ;;  %123 = sbr.rel (%p805_p4) target bundleno = 29 (0x1d), region = 24 }
   0xe   : > { %126 = sbr.rel (!%p51_p3) target bundleno = 29 (0x1d), region = 28  ;;  %s128_s20 = sand.u32 (%p51_p3), 1, %s937_s13  }
   0xf   : > { %s848_s21 = sshll.u32 (%p51_p3), %s941_s14, 5  ;;  %s849_s22 = smul.u32 (%p51_p3), 160, %s128_s20 }
  0x10   : > { %s1001_s25 = scalar_lea.vmem (%p51_p3), %s1210_s1, %s848_s21 }
  0x11   : > { %v146_v0 = vld [vmem:[%s1001_s25] sm:$0xff] (%p51_p3)  ;;  %v148_v1 = vld [vmem:[%s1001_s25 + $0x8] sm:$0xff] (%p51_p3)  ;;  %v150_v2 = vld [vmem:[%s1001_s25 + $0x10] sm:$0xff] (%p51_p3)  ;;  %s1009_s26 = scalar_lea.vmem (%p51_p3), [#allocation3], %s849_s22 }
  0x12   : > { %v152_v3 = vld [vmem:[%s1001_s25 + $0x18] sm:$0xff] (%p51_p3)  ;;  %v154_v4 = vld [vmem:[%s1001_s25 + $0x40] sm:$0xff] (%p51_p3)  ;;  %v156_v5 = vld [vmem:[%s1001_s25 + $0x48] sm:$0xff] (%p51_p3)  ;;  %147 = vst [vmem:[%s1009_s26] sm:$0xff] (%p51_p3), %v146_v0 }
  0x13   : > { %149 = vst [vmem:[%s1009_s26 + $0x8] sm:$0xff] (%p51_p3), %v148_v1  ;;  %151 = vst [vmem:[%s1009_s26 + $0x10] sm:$0xff] (%p51_p3), %v150_v2  ;;  %v158_v6 = vld [vmem:[%s1001_s25 + $0x50] sm:$0xff] (%p51_p3)  ;;  %v160_v7 = vld [vmem:[%s1001_s25 + $0x58] sm:$0xff] (%p51_p3) }
  0x14   : > { %153 = vst [vmem:[%s1009_s26 + $0x18] sm:$0xff] (%p51_p3), %v152_v3  ;;  %155 = vst [vmem:[%s1009_s26 + $0x20] sm:$0xff] (%p51_p3), %v154_v4  ;;  %v162_v8 = vld [vmem:[%s1001_s25 + $0x80] sm:$0xff] (%p51_p3)  ;;  %v164_v9 = vld [vmem:[%s1001_s25 + $0x88] sm:$0xff] (%p51_p3) }
  0x15   : > { %157 = vst [vmem:[%s1009_s26 + $0x28] sm:$0xff] %v156_v5  ;;  %159 = vst [vmem:[%s1009_s26 + $0x30] sm:$0xff] %v158_v6  ;;  %v166_v10 = vld [vmem:[%s1001_s25 + $0x90] sm:$0xff]  ;;  %v168_v11 = vld [vmem:[%s1001_s25 + $0x98] sm:$0xff] }
  0x16   : > { %161 = vst [vmem:[%s1009_s26 + $0x38] sm:$0xff] %v160_v7  ;;  %163 = vst [vmem:[%s1009_s26 + $0x40] sm:$0xff] %v162_v8  ;;  %v170_v12 = vld [vmem:[%s1001_s25 + $0xc0] sm:$0xff]  ;;  %v172_v13 = vld [vmem:[%s1001_s25 + $0xc8] sm:$0xff] }
  0x17   : > { %165 = vst [vmem:[%s1009_s26 + $0x48] sm:$0xff] %v164_v9  ;;  %167 = vst [vmem:[%s1009_s26 + $0x50] sm:$0xff] %v166_v10  ;;  %v174_v14 = vld [vmem:[%s1001_s25 + $0xd0] sm:$0xff]  ;;  %v176_v15 = vld [vmem:[%s1001_s25 + $0xd8] sm:$0xff] }
  0x18   : > { %169 = vst [vmem:[%s1009_s26 + $0x58] sm:$0xff] %v168_v11  ;;  %171 = vst [vmem:[%s1009_s26 + $0x60] sm:$0xff] %v170_v12  ;;  %v178_v16 = vld [vmem:[%s1001_s25 + $0x100] sm:$0xff]  ;;  %v180_v17 = vld [vmem:[%s1001_s25 + $0x108] sm:$0xff] }
  0x19   : > { %173 = vst [vmem:[%s1009_s26 + $0x68] sm:$0xff] %v172_v13  ;;  %175 = vst [vmem:[%s1009_s26 + $0x70] sm:$0xff] %v174_v14  ;;  %v182_v18 = vld [vmem:[%s1001_s25 + $0x110] sm:$0xff]  ;;  %v184_v19 = vld [vmem:[%s1001_s25 + $0x118] sm:$0xff] }
  0x1a   : > { %177 = vst [vmem:[%s1009_s26 + $0x78] sm:$0xff] %v176_v15  ;;  %179 = vst [vmem:[%s1009_s26 + $0x80] sm:$0xff] %v178_v16 }
  0x1b   : > { %181 = vst [vmem:[%s1009_s26 + $0x88] sm:$0xff] %v180_v17  ;;  %183 = vst [vmem:[%s1009_s26 + $0x90] sm:$0xff] %v182_v18 }
  0x1c   : > { %185 = vst [vmem:[%s1009_s26 + $0x98] sm:$0xff] %v184_v19 }
  0x1d PF: > { %p808_p5 = scmp.ge.s32.totalorder %s941_s14, 1  ;;  %p190_p6 = scmp.lt.s32.totalorder %s941_s14, 3 }
  0x1f   : > { %p191_p7 = pnand %p808_p5, %p190_p6 }
  0x20   : > { %s197_s27 = sand.u32 (!%p191_p7), 1, %s933_s12   ;;  %v943_v20 = vmov (!%p191_p7), 0   ;;  %vm342_vm0 = vcmask (!%p191_p7), 1043456   ;;  %v217_v55 = vld [vmem:[%s1209_s0] sm:$0xf] (!%p191_p7)  ;;  %vm338_vm1 = vcmask (!%p191_p7), 326656  }
  0x21   : > { %194 = sbr.rel (%p191_p7) target bundleno = 715 (0x2cb), region = 51  ;;  %399 = vmatprep.mubr.bf16.mxu0 (!%p191_p7), %v943_v20  ;;  %440 = vmatprep.mubr.bf16.mxu1 (!%p191_p7), %v943_v20  ;;  %s841_s5 = sshll.u32 (!%p191_p7), %s981_s15, 10 }
  0x22   : > { %s850_s28 = smul.u32 (!%p191_p7), 160, %s197_s27  ;;  %s532_s6 = sshra.s32 (!%p191_p7), %s841_s5, 7 }
  0x23   : > { %s842_s7 = sshll.u32 (!%p191_p7), %s532_s6, 3  ;;  %p843_p8 = scmp.ne.s32.totalorder (!%p191_p7), %s981_s15, 1 }
  0x24   : > { %s1050_s29 = scalar_lea.vmem (!%p191_p7), [#allocation3], %s850_s28  ;;  %s535_s8 = scalar_lea.vmem (!%p191_p7), [#allocation2], %s842_s7 }
  0x25   : > { %v218_v21 = vld [vmem:[%s1050_s29] sm:$0xff] (!%p191_p7)  ;;  %v219_v23 = vld [vmem:[%s1050_s29 + $0x8] sm:$0xff] (!%p191_p7)  ;;  %v220_v43 = vld [vmem:[%s1050_s29 + $0x10] sm:$0xff] (!%p191_p7) }
  0x26   : > { %v222_v22 = vld [vmem:[%s1050_s29 + $0x20] sm:$0xff] (!%p191_p7)  ;;  %v223_v25 = vld [vmem:[%s1050_s29 + $0x28] sm:$0xff] (!%p191_p7)  ;;  %v224_v44 = vld [vmem:[%s1050_s29 + $0x30] sm:$0xff] (!%p191_p7) }
  0x27   : > { %v810_v24 = vcombine.high (!%p191_p7), %v218_v21, %v222_v22  ;;  %v809_v26 = vcombine.low (!%p191_p7), %v218_v21, %v222_v22  ;;  %v226_v27 = vld [vmem:[%s1050_s29 + $0x40] sm:$0xff] (!%p191_p7)  ;;  %v812_v29 = vcombine.high (!%p191_p7), %v219_v23, %v223_v25  ;;  %v811_v30 = vcombine.low (!%p191_p7), %v219_v23, %v223_v25  ;;  %v227_v32 = vld [vmem:[%s1050_s29 + $0x48] sm:$0xff] (!%p191_p7)  ;;  %v221_v45 = vld [vmem:[%s1050_s29 + $0x18] sm:$0xff] (!%p191_p7) }
  0x28   : > { %v230_v28 = vld [vmem:[%s1050_s29 + $0x60] sm:$0xff]  ;;  %v231_v33 = vld [vmem:[%s1050_s29 + $0x68] sm:$0xff]  ;;  %v225_v46 = vld [vmem:[%s1050_s29 + $0x38] sm:$0xff]  ;;  %v814_v48 = vcombine.high %v220_v43, %v224_v44  ;;  %v813_v56 = vcombine.low %v220_v43, %v224_v44  ;;  %vm551_vm2 = vcmask (!%p843_p8), 1041408  }
  0x29   : > { %v818_v31 = vcombine.high %v226_v27, %v230_v28  ;;  %v234_v34 = vld [vmem:[%s1050_s29 + $0x80] sm:$0xff]  ;;  %367 = vmatprep.subr.bf16.mxu0 %v810_v24  ;;  %v820_v35 = vcombine.high %v227_v32, %v231_v33  ;;  %v235_v36 = vld [vmem:[%s1050_s29 + $0x88] sm:$0xff]  ;;  %408 = vmatprep.subr.bf16.mxu1 %v812_v29  ;;  %v817_v37 = vcombine.low %v226_v27, %v230_v28  ;;  %v228_v51 = vld [vmem:[%s1050_s29 + $0x50] sm:$0xff] }
  0x2a   : > { %368 = vmatpush1.bf16.msra.mxu0 %v809_v26  ;;  %409 = vmatpush1.bf16.msra.mxu1 %v811_v30  ;;  %v819_v38 = vcombine.low %v227_v32, %v231_v33  ;;  %v826_v39 = vcombine.high %v234_v34, %v234_v34  ;;  %v825_v40 = vcombine.low %v234_v34, %v234_v34  ;;  %v232_v52 = vld [vmem:[%s1050_s29 + $0x70] sm:$0xff]  ;;  %v229_v53 = vld [vmem:[%s1050_s29 + $0x58] sm:$0xff] }
  0x2b   : > { %369 = vmatprep.subr.bf16.mxu0 %v818_v31  ;;  %410 = vmatprep.subr.bf16.mxu1 %v820_v35  ;;  %v828_v41 = vcombine.high %v235_v36, %v235_v36  ;;  %v827_v42 = vcombine.low %v235_v36, %v235_v36  ;;  %v816_v50 = vcombine.high %v221_v45, %v225_v46  ;;  %v233_v54 = vld [vmem:[%s1050_s29 + $0x78] sm:$0xff]  ;;  %v236_v60 = vld [vmem:[%s1050_s29 + $0x90] sm:$0xff] }
  0x2c   : > { %v344_v47 = vsel %vm342_vm0, %v825_v40, 0  ;;  %v815_v57 = vcombine.low %v221_v45, %v225_v46  ;;  %v822_v58 = vcombine.high %v228_v51, %v232_v52  ;;  %v824_v59 = vcombine.high %v229_v53, %v233_v54  ;;  %v237_v61 = vld [vmem:[%s1050_s29 + $0x98] sm:$0xff] }
  0x2d   : > { %v350_v49 = vsel %vm342_vm0, %v827_v42, 0  ;;  %v821_v62 = vcombine.low %v228_v51, %v232_v52  ;;  %v823_v63 = vcombine.low %v229_v53, %v233_v54  ;;  %v830_v0 = vcombine.high %v236_v60, %v236_v60 }
  0x2e   : > { %370 = vmatpush1.bf16.msra.mxu0 %v817_v37  ;;  %411 = vmatpush1.bf16.msra.mxu1 %v819_v38  ;;  %v829_v1 = vcombine.low %v236_v60, %v236_v60  ;;  %v832_v2 = vcombine.high %v237_v61, %v237_v61  ;;  %v831_v3 = vcombine.low %v237_v61, %v237_v61 }
  0x2f   : > { %833 = vmatprep.subr.msk.bf16.mxu0 %vm342_vm0, %v826_v39  ;;  %835 = vmatprep.subr.msk.bf16.mxu1 %vm342_vm0, %v828_v41 }
  0x30   : > { %v356_v4 = vsel %vm342_vm0, %v829_v1, 0  ;;  %v362_v5 = vsel %vm342_vm0, %v831_v3, 0 }
  0x32   : > { %372 = vmatpush1.bf16.msra.mxu0 %v344_v47  ;;  %413 = vmatpush1.bf16.msra.mxu1 %v350_v49 }
  0x33   : > { %449 = vmatprep.subr.bf16.mxu0 %v814_v48  ;;  %490 = vmatprep.subr.bf16.mxu1 %v816_v50 }
  0x35   : > { %834 = vmatmul.mubr.msk.bf16.vlgmr.msra.gmra.mrb[0].mxu0 %vm338_vm1, %v217_v55  ;;  %836 = vmatmul.mubr.msk.bf16.vlgmr.msra.gmra.mrb[0].mxu1 %vm338_vm1, %v217_v55 }
  0x36   : > { %450 = vmatpush1.bf16.msra.mxu0 %v813_v56  ;;  %491 = vmatpush1.bf16.msra.mxu1 %v815_v57 }
  0x37   : > { %451 = vmatprep.subr.bf16.mxu0 %v822_v58  ;;  %492 = vmatprep.subr.bf16.mxu1 %v824_v59 }
  0x38   : > { %481 = vmatprep.mubr.bf16.mxu0 %v943_v20  ;;  %522 = vmatprep.mubr.bf16.mxu1 %v943_v20 }
  0x3a   : > { %452 = vmatpush1.bf16.msra.mxu0 %v821_v62  ;;  %493 = vmatpush1.bf16.msra.mxu1 %v823_v63 }
  0x3b   : > { %837 = vmatprep.subr.msk.bf16.mxu0 %vm342_vm0, %v830_v0  ;;  %839 = vmatprep.subr.msk.bf16.mxu1 %vm342_vm0, %v832_v2 }
  0x3e   : > { %454 = vmatpush1.bf16.msra.mxu0 %v356_v4  ;;  %495 = vmatpush1.bf16.msra.mxu1 %v362_v5 }
  0x41   : > { %838 = vmatmul.mubr.msk.bf16.vlgmr.msra.gmra.mrb[4].mxu0 %vm338_vm1, %v217_v55  ;;  %840 = vmatmul.mubr.msk.bf16.vlgmr.msra.gmra.mrb[4].mxu1 %vm338_vm1, %v217_v55 }
 0x108   : > { %v401_v6 = vpop.f32.mrb[0].mxu0  ;;  %v442_v7 = vpop.f32.mrb[0].mxu1 }
 0x109   : > { %536 = vst [vmem:[%s535_s8] sm:$0xff] %v401_v6  ;;  %v403_v8 = vpop.f32.mrb[1].mxu0  ;;  %538 = vst [vmem:[%s535_s8 + $0x10] sm:$0xff] %v442_v7  ;;  %v444_v9 = vpop.f32.mrb[1].mxu1 }
 0x10a   : > { %537 = vst [vmem:[%s535_s8 + $0x8] sm:$0xff] %v403_v8  ;;  %v405_v10 = vpop.f32.mrb[2].mxu0  ;;  %539 = vst [vmem:[%s535_s8 + $0x18] sm:$0xff] %v444_v9  ;;  %v446_v11 = vpop.f32.mrb[2].mxu1 }
 0x10b   : > { %v406_v12 = vpop.f32.mrb[3].mxu0  ;;  %v447_v13 = vpop.f32.mrb[3].mxu1 }
 0x111   : > { %547 = sbr.rel (%p843_p8) target bundleno = 700 (0x2bc), region = 59 }
 0x114   : > { %v483_v14 = vpop.f32.mrb[4].mxu0  ;;  %v524_v15 = vpop.f32.mrb[4].mxu1 }
 0x115   : > { %540 = vst [vmem:[%s535_s8 + $0x20] sm:$0xff] %v483_v14  ;;  %v485_v16 = vpop.f32.mrb[5].mxu0  ;;  %542 = vst [vmem:[%s535_s8 + $0x30] sm:$0xff] %v524_v15  ;;  %v526_v17 = vpop.f32.mrb[5].mxu1 }
 0x116   : > { %541 = vst [vmem:[%s535_s8 + $0x28] sm:$0xff] %v485_v16  ;;  %v487_v18 = vpop.f32.mrb[6].mxu0  ;;  %543 = vst [vmem:[%s535_s8 + $0x38] sm:$0xff] %v526_v17  ;;  %v528_v19 = vpop.f32.mrb[6].mxu1 }
 0x117   : > { %v488_v20 = vpop.f32.mrb[7].mxu0  ;;  %v529_v21 = vpop.f32.mrb[7].mxu1 }
 0x11d   : > { %v1091_v22 = vld [vmem:[#allocation2 + $0x20] sm:$0x3]  ;;  %v1093_v23 = vld [vmem:[#allocation2 + $0x18] sm:$0x3]  ;;  %v1109_v31 = vld [vmem:[#allocation2 + $0x8] sm:$0x3] }
 0x11e   : > { %v622_v24 = vsel %vm551_vm2, %v1091_v22, inf  ;;  %v616_v25 = vsel %vm551_vm2, %v1093_v23, inf  ;;  %v625_v26 = vsel %vm551_vm2, %v1091_v22, -inf  ;;  %v619_v27 = vsel %vm551_vm2, %v1093_v23, -inf  ;;  %v1103_v28 = vld [vmem:[#allocation2] sm:$0x3] }
 0x11f   : > { %623 = vmin.xlane.f32.xlu1 %v622_v24  ;;  %617 = vmin.xlane.f32.xlu0 %v616_v25  ;;  %v555_v29 = vsel %vm551_vm2, %v1103_v28, -inf  ;;  %v552_v30 = vsel %vm551_vm2, %v1103_v28, inf  ;;  %v561_v32 = vsel %vm551_vm2, %v1109_v31, -inf  ;;  %v558_v33 = vsel %vm551_vm2, %v1109_v31, inf  ;;  %v1115_v34 = vld [vmem:[#allocation2 + $0x28] sm:$0x3] }
 0x120   : > { %v631_v35 = vsel %vm551_vm2, %v1115_v34, -inf  ;;  %v628_v36 = vsel %vm551_vm2, %v1115_v34, inf  ;;  %v1121_v37 = vld [vmem:[#allocation2 + $0x30] sm:$0x3]  ;;  %v1127_v40 = vld [vmem:[#allocation2 + $0x38] sm:$0x3] }
 0x121   : > { %v688_v38 = vsel %vm551_vm2, %v1121_v37, -inf  ;;  %v685_v39 = vsel %vm551_vm2, %v1121_v37, inf  ;;  %v694_v41 = vsel %vm551_vm2, %v1127_v40, -inf  ;;  %v691_v42 = vsel %vm551_vm2, %v1127_v40, inf  ;;  %v1133_v43 = vld [vmem:[#allocation2 + $0x10] sm:$0x3] }
 0x122   : > { %v567_v44 = vsel %vm551_vm2, %v1133_v43, -inf  ;;  %v564_v45 = vsel %vm551_vm2, %v1133_v43, inf  ;;  %v1139_v46 = vld [vmem:[#allocation2 + $0x40] sm:$0x3]  ;;  %v652_v25 = vld [vmem:[%s1211_s2 + $0x6] sm:$0x3] }
 0x123   : > { %626 = vmax.xlane.f32.xlu1 %v625_v26  ;;  %620 = vmax.xlane.f32.xlu0 %v619_v27  ;;  %v700_v47 = vsel %vm551_vm2, %v1139_v46, -inf  ;;  %v697_v48 = vsel %vm551_vm2, %v1139_v46, inf  ;;  %v653_v26 = vld [vmem:[%s1211_s2 + $0x8] sm:$0x3]  ;;  %v654_v27 = vld [vmem:[%s1211_s2 + $0xa] sm:$0x3] }
 0x127   : > { %556 = vmax.xlane.f32.xlu1 %v555_v29  ;;  %553 = vmin.xlane.f32.xlu0 %v552_v30 }
 0x12b   : > { %562 = vmax.xlane.f32.xlu1 %v561_v32  ;;  %559 = vmin.xlane.f32.xlu0 %v558_v33 }
 0x12f   : > { %632 = vmax.xlane.f32.xlu1 %v631_v35  ;;  %629 = vmin.xlane.f32.xlu0 %v628_v36 }
 0x133   : > { %689 = vmax.xlane.f32.xlu1 %v688_v38  ;;  %686 = vmin.xlane.f32.xlu0 %v685_v39 }
 0x137   : > { %695 = vmax.xlane.f32.xlu1 %v694_v41  ;;  %692 = vmin.xlane.f32.xlu0 %v691_v42 }
 0x13b   : > { %568 = vmax.xlane.f32.xlu1 %v567_v44  ;;  %565 = vmin.xlane.f32.xlu0 %v564_v45 }
 0x13f   : > { %701 = vmax.xlane.f32.xlu1 %v700_v47  ;;  %698 = vmin.xlane.f32.xlu0 %v697_v48 }
 0x1ac   : > { %v624_v49 = vpop.xlane.xlu1 %623  ;;  %v618_v50 = vpop.xlane.xlu0 %617 }
 0x1b0   : > { %v627_v51 = vpop.xlane.xlu1 %626  ;;  %v621_v52 = vpop.xlane.xlu0 %620 }
 0x1b1   : > { %v635_v57 = vsub.f32 %v627_v51, %v624_v49  ;;  %v634_v58 = vsub.f32 %v621_v52, %v618_v50  ;;  %v644_v2 = vadd.f32 %v627_v51, %v624_v49  ;;  %v640_v3 = vadd.f32 %v621_v52, %v618_v50 }
 0x1b3   : > { %v636_v61 = vmax.f32 %v634_v58, %v635_v57  ;;  %v645_v8 = vmul.f32 0.5, %v644_v2  ;;  %v641_v9 = vmul.f32 0.5, %v640_v3  ;;  %v588_v2 = vld [vmem:[%s1211_s2] sm:$0x3] }
 0x1b4   : > { %v557_v53 = vpop.xlane.xlu1 %556  ;;  %v554_v54 = vpop.xlane.xlu0 %553 }
 0x1b5   : > { %v570_v11 = vsub.f32 %v557_v53, %v554_v54  ;;  %v646_v17 = vsub.f32 %v1091_v22, %v645_v8  ;;  %v642_v18 = vsub.f32 %v1093_v23, %v641_v9  ;;  %v663_v22 = vlaneseq }
 0x1b6   : > { %v576_v29 = vadd.f32 %v557_v53, %v554_v54 }
 0x1b7   : > { %v664_v47 = vand.u32 127, %v663_v22 }
 0x1b8   : > { %v563_v55 = vpop.xlane.xlu1 %562  ;;  %v560_v56 = vpop.xlane.xlu0 %559  ;;  %v577_v50 = vmul.f32 0.5, %v576_v29 }
 0x1b9   : > { %v571_v7 = vsub.f32 %v563_v55, %v560_v56  ;;  %v580_v35 = vadd.f32 %v563_v55, %v560_v56  ;;  %vm665_vm3 = vcmp.lt.s32.totalorder %v664_v47, 64 }
 0x1bb   : > { %v572_v14 = vmax.f32 %v570_v11, %v571_v7  ;;  %v581_v51 = vmul.f32 0.5, %v580_v35 }
 0x1bc   : > { %v633_v59 = vpop.xlane.xlu1 %632  ;;  %v630_v60 = vpop.xlane.xlu0 %629 }
 0x1bd   : > { %v637_v62 = vsub.f32 %v633_v59, %v630_v60  ;;  %v648_v4 = vadd.f32 %v633_v59, %v630_v60  ;;  %v578_v59 = vsub.f32 %v1103_v28, %v577_v50  ;;  %v582_v60 = vsub.f32 %v1109_v31, %v581_v51  ;;  %v590_v31 = vld [vmem:[%s1211_s2 + $0x4] sm:$0x3] }
 0x1bf   : > { %v638_v63 = vmax.f32 %v636_v61, %v637_v62  ;;  %v649_v10 = vmul.f32 0.5, %v648_v4 }
 0x1c0   : > { %v690_v0 = vpop.xlane.xlu1 %689  ;;  %v687_v1 = vpop.xlane.xlu0 %686 }
 0x1c1   : > { %897 = vrcp.f32 %v638_v63  ;;  %v650_v19 = vsub.f32 %v1115_v34, %v649_v10  ;;  %v703_v21 = vsub.f32 %v690_v0, %v687_v1  ;;  %v709_v58 = vadd.f32 %v690_v0, %v687_v1  ;;  %v589_v0 = vld [vmem:[%s1211_s2 + $0x2] sm:$0x3] }
 0x1c3   : > { %v710_v3 = vmul.f32 0.5, %v709_v58 }
 0x1c4   : > { %v696_v5 = vpop.xlane.xlu1 %695  ;;  %v693_v6 = vpop.xlane.xlu0 %692 }
 0x1c5   : > { %v704_v15 = vsub.f32 %v696_v5, %v693_v6  ;;  %v713_v55 = vadd.f32 %v696_v5, %v693_v6 }
 0x1c7   : > { %v705_v36 = vmax.f32 %v703_v21, %v704_v15  ;;  %v714_v4 = vmul.f32 0.5, %v713_v55  ;;  %v722_v15 = vld [vmem:[%s1211_s2 + $0xe] sm:$0x3] }
 0x1c8   : > { %v569_v12 = vpop.xlane.xlu1 %568  ;;  %v566_v13 = vpop.xlane.xlu0 %565 }
 0x1c9   : > { %v573_v16 = vsub.f32 %v569_v12, %v566_v13  ;;  %v584_v39 = vadd.f32 %v569_v12, %v566_v13  ;;  %v711_v12 = vsub.f32 %v1121_v37, %v710_v3  ;;  %v715_v13 = vsub.f32 %v1127_v40, %v714_v4 }
 0x1cb   : > { %v898_v20 = vpop.eup %897  ;;  %v574_v24 = vmax.f32 %v572_v14, %v573_v16  ;;  %v585_v52 = vmul.f32 0.5, %v584_v39  ;;  %v721_v14 = vld [vmem:[%s1211_s2 + $0xc] sm:$0x3] }
 0x1cc   : > { %v651_v23 = vmul.f32 %v898_v20, %v650_v19  ;;  %v702_v30 = vpop.xlane.xlu1 %701  ;;  %v699_v32 = vpop.xlane.xlu0 %698  ;;  %v643_v33 = vmul.f32 %v898_v20, %v642_v18  ;;  %v647_v34 = vmul.f32 %v898_v20, %v646_v17 }
 0x1cd   : > { %899 = vrcp.f32 %v574_v24  ;;  %v706_v38 = vsub.f32 %v702_v30, %v699_v32  ;;  %v717_v53 = vadd.f32 %v702_v30, %v699_v32  ;;  %v586_v61 = vsub.f32 %v1133_v43, %v585_v52 }
 0x1ce   : > { %v655_v41 = vsub.f32 %v643_v33, %v652_v25  ;;  %v657_v42 = vsub.f32 %v647_v34, %v653_v26  ;;  %v660_v44 = vsub.f32 %v651_v23, %v654_v27 }
 0x1cf   : > { %v707_v45 = vmax.f32 %v705_v36, %v706_v38  ;;  %v718_v62 = vmul.f32 0.5, %v717_v53 }
 0x1d0   : > { %v656_v48 = vand.u32 2147483647, %v655_v41  ;;  %v658_v49 = vand.u32 2147483647, %v657_v42  ;;  %v661_v57 = vand.u32 2147483647, %v660_v44 }
 0x1d1   : > { %901 = vrcp.f32 %v707_v45  ;;  %v719_v7 = vsub.f32 %v1139_v46, %v718_v62  ;;  %v723_v46 = vld [vmem:[%s1211_s2 + $0x10] sm:$0x3] }
 0x1d2   : > { %v659_v54 = vadd.f32 %v658_v49, %v656_v48 }
 0x1d4   : > { %v662_v56 = vadd.f32 %v661_v57, %v659_v54 }
 0x1d6   : > { %v666_v63 = vsel %vm665_vm3, %v662_v56, 0.0 }
 0x1d7   : > { %v900_v1 = vpop.eup %899  ;;  %v667_v28 = vsel %vm551_vm2, %v666_v63, 0.0 }
 0x1d8   : > { %v587_v43 = vmul.f32 %v900_v1, %v586_v61  ;;  %668 = vadd.xlane.f32.xlu1 %v667_v28  ;;  %v579_v5 = vmul.f32 %v900_v1, %v578_v59  ;;  %v583_v6 = vmul.f32 %v900_v1, %v582_v60 }
 0x1da   : > { %v591_v8 = vsub.f32 %v579_v5, %v588_v2  ;;  %v593_v9 = vsub.f32 %v583_v6, %v589_v0  ;;  %v596_v10 = vsub.f32 %v587_v43, %v590_v31 }
 0x1db   : > { %v902_v11 = vpop.eup %901 }
 0x1dc   : > { %v720_v16 = vmul.f32 %v902_v11, %v719_v7  ;;  %v592_v17 = vand.u32 2147483647, %v591_v8  ;;  %v594_v18 = vand.u32 2147483647, %v593_v9  ;;  %v712_v19 = vmul.f32 %v902_v11, %v711_v12 }
 0x1dd   : > { %v716_v20 = vmul.f32 %v902_v11, %v715_v13  ;;  %v597_v21 = vand.u32 2147483647, %v596_v10 }
 0x1de   : > { %v595_v37 = vadd.f32 %v594_v18, %v592_v17  ;;  %v724_v40 = vsub.f32 %v712_v19, %v721_v14  ;;  %v729_v25 = vsub.f32 %v720_v16, %v723_v46 }
 0x1df   : > { %v726_v24 = vsub.f32 %v716_v20, %v722_v15 }
 0x1e0   : > { %v598_v26 = vadd.f32 %v597_v21, %v595_v37  ;;  %v725_v27 = vand.u32 2147483647, %v724_v40  ;;  %v730_v30 = vand.u32 2147483647, %v729_v25 }
 0x1e1   : > { %v727_v22 = vand.u32 2147483647, %v726_v24 }
 0x1e2   : > { %v599_v29 = vsel %vm551_vm2, %v598_v26, 0.0 }
 0x1e3   : > { %600 = vadd.xlane.f32.xlu0 %v599_v29  ;;  %v728_v23 = vadd.f32 %v727_v22, %v725_v27 }
 0x1e5   : > { %v731_v32 = vadd.f32 %v730_v30, %v728_v23 }
 0x1e7   : > { %v732_v33 = vsel %vm665_vm3, %v731_v32, 0.0 }
 0x1e8   : > { %v733_v34 = vsel %vm551_vm2, %v732_v33, 0.0 }
 0x1e9   : > { %734 = vadd.xlane.f32.xlu0 %v733_v34 }
 0x265   : > { %v669_v35 = vpop.xlane.xlu1 %668 }
 0x266   : > { %v670_v36 = vrot.slane %v669_v35, 4 }
 0x268   : > { %v671_v38 = vadd.f32 %v670_v36, %v669_v35 }
 0x26a   : > { %v672_v39 = vrot.slane %v671_v38, 2 }
 0x26c   : > { %v673_v45 = vadd.f32 %v672_v39, %v671_v38 }
 0x26e   : > { %v674_v52 = vrot.slane %v673_v45, 1 }
 0x270   : > { %v601_v41 = vpop.xlane.xlu0 %600  ;;  %v675_v58 = vadd.f32 %v674_v52, %v673_v45 }
 0x271   : > { %v602_v42 = vrot.slane %v601_v41, 4 }
 0x273   : > { %v603_v44 = vadd.f32 %v602_v42, %v601_v41 }
 0x275   : > { %v604_v48 = vrot.slane %v603_v44, 2 }
 0x276   : > { %v735_v49 = vpop.xlane.xlu0 %734 }
 0x277   : > { %v736_v50 = vrot.slane %v735_v49, 4  ;;  %v605_v51 = vadd.f32 %v604_v48, %v603_v44 }
 0x279   : > { %v737_v53 = vadd.f32 %v736_v50, %v735_v49  ;;  %v606_v54 = vrot.slane %v605_v51, 1 }
 0x27b   : > { %v738_v47 = vrot.slane %v737_v53, 2  ;;  %v607_v57 = vadd.f32 %v606_v54, %v605_v51 }
 0x27d   : > { %v739_v55 = vadd.f32 %v738_v47, %v737_v53  ;;  %851 = vpush %v607_v57 }
 0x27e   : > { %853 = vpush %v675_v58 }
 0x27f   : > { %v740_v56 = vrot.slane %v739_v55, 1 }
 0x281   : > { %v741_v59 = vadd.f32 %v740_v56, %v739_v55 }
 0x283   : > { %855 = vpush %v741_v59 }
 0x2ae   : > { %s852_s4 = spop %851 }
 0x2af   : > { %s854_s5 = spop %853  ;;  %s611_s8 = smul.f32 0.0013020834, %s852_s4 }
 0x2b0   : > { %s679_s6 = smul.f32 0.0026041667, %s854_s5 }
 0x2b2   : > { %s680_s7 = smul.f32 2.0, %s679_s6 }
 0x2b4   : > { %s856_s9 = spop %855  ;;  %s681_s11 = sadd.f32 %s680_s7, %s611_s8 }
 0x2b5   : > { %s745_s10 = smul.f32 0.0026041667, %s856_s9 }
 0x2b7   : > { %s746_s12 = smul.f32 0.5, %s745_s10 }
 0x2b9   : > { %s747_s14 = sadd.f32 %s746_s12, %s681_s11 }
 0x2bb   : > { %749 = sst [smem:[#allocation4]] %s747_s14 }
 0x2bc PF: > { %p861_p9 = scmp.eq.s32.totalorder %s981_s15, 1  ;;  %s903_s20 = scalar_lea.hbm %s1212_s3, 16 }
 0x2bd   : > { %p904_p10 = scmp.ne.s32.totalorder %s1212_s3, %s903_s20  ;;  %p909_p13 = scmp.lt.u32.totalorder %s903_s20, %s1212_s3 }
 0x2bf   : > { %p905_p11 = pnand %p904_p10, %p861_p9 }
 0x2c1   : > { %p906_p12 = pneg %p905_p11 }
 0x2c3   : > { %p911_p0 = pnand %p909_p13, %p906_p12 }
 0x2c5   : > { %914 = shalt.err (!%p911_p0)
}
 0x2c6   : > { %s944_s25 = smov [#allocation4]  }
 0x2c7   : > { %858 = dma.smem_to_hbm (%p861_p9), %s944_s25, 16, %s1212_s3, [#allocation5]  }
 0x2c8   : > { %928 = dma.done.wait (%p861_p9), [#allocation5], 16  }
 0x2c9   : > { %930 = vsyncadd (%p861_p9), [#allocation5], 4294967280 }
 0x2ca   : > { %763 = sfence }
 0x2cb PF: > { %p11_p1 = scmp.ge.s32.totalorder %s984_s16, 4   ;;  %s1213_s12 = smov %s937_s13 }
 0x2cc   : > { %s1214_s13 = smov %s993_s19  ;;  %s1215_s14 = smov %s984_s16 }
 0x2cd   :  { %13 = sbr.rel (!%p11_p1) target bundleno = 2 (0x2), region = 93 }
 0x2d4   :  { %769 = vsyncpa [#allocation5], 1 }
 0x2d5   :  { %771 = vsyncpa [#allocation5 + $0x1], 1 }

</bundles_post_ra>
